<compile_context>
chip_gen: v7x
topology: tpu7x:2x2x1
jax: 0.10.0
libtpu: 0.0.40
codegen_flags: <defaults>
</compile_context>

<pallas_src>
import functools

import numpy as np
import jax
import jax.numpy as jnp
from jax.experimental import pallas as pl
from jax.experimental.pallas import tpu as pltpu


def _round_up(x, m):
    return ((x + m - 1) // m) * m


def _consistency_kernel(frames_ref, bhi_ref, blo_ref, alt_ref,
                        ymag_ref, ynyq_ref, out_ref, acc_ref, accn_ref,
                        *, compress_factor, f_half):
    """One grid step processes a (tm, n_fft) tile of frames.

    Grid is (num_partitions, tiles_per_partition); axis 0 is "parallel"
    (megacore sharding on v7x — each core gets its own VMEM scratch, so the
    init/accumulate/reduce below never races), axis 1 is the "arbitrary"
    reduction over row tiles.

    frames_ref : (tm, n_fft)      bf16 raw frames (window folded into bases)
    bhi_ref    : (n_fft, 2*Fp)    bf16 hi half of [win*cos | win*(-sin)]
    blo_ref    : (n_fft, 2*Fp)    bf16 lo half (basis - hi), restores ~f32
    alt_ref    : (1, n_fft)       f32  win[k]*(-1)^k  (Nyquist-bin column)
    ymag_ref   : (tm, Fp)         f32  target magnitude, bins 0..F-1
    ynyq_ref   : (tm, 1)          f32  target magnitude, Nyquist bin
    out_ref    : (1, 1) SMEM      per-partition sum of squared errors
    acc_ref    : (tm, Fp) VMEM    elementwise squared-error accumulator
    accn_ref   : (tm, 1)  VMEM    Nyquist squared-error accumulator
    """
    j = pl.program_id(1)

    @pl.when(j == 0)
    def _():
        acc_ref[...] = jnp.zeros_like(acc_ref)
        accn_ref[...] = jnp.zeros_like(accn_ref)

    f = frames_ref[...]                                           # (tm, n_fft) bf16
    # Fused [re | im] DFT: one bf16 MXU matmul per basis half (hi + lo).
    reim = jnp.dot(f, bhi_ref[...], preferred_element_type=jnp.float32)
    reim = reim + jnp.dot(f, blo_ref[...], preferred_element_type=jnp.float32)
    re = reim[:, :f_half]                                         # 128-aligned slice
    im = reim[:, f_half:]

    chalf = jnp.float32(0.5 * compress_factor)
    power = re * re + im * im + jnp.float32(1e-9)
    # mag**c = exp(0.5*c*log(power)) — 2 EUP transcendentals, no sqrt.
    # TODO(synk): optional bf16 log/exp on v6e/v7x (keep f32 on v5e EUP).
    mag_c = jnp.exp(chalf * jnp.log(power))
    diff = mag_c - ymag_ref[...]
    acc_ref[...] += diff * diff                                   # VPU

    # Nyquist bin f = n_fft/2 (imaginary part is identically 0):
    # VPU multiply + XLU row-reduce, kept out of the MXU so all RHS columns
    # stay 100% utilized.
    re_n = jnp.sum(f * alt_ref[...], axis=-1, keepdims=True)      # (tm, 1) f32
    mag_n = jnp.exp(chalf * jnp.log(re_n * re_n + jnp.float32(1e-9)))
    dn = mag_n - ynyq_ref[...]
    accn_ref[...] += dn * dn

    @pl.when(j == pl.num_programs(1) - 1)
    def _():
        out_ref[0, 0] = jnp.sum(acc_ref[...]) + jnp.sum(accn_ref[...])


def consistency_loss(wav, y_mag, *, fft_size, hop_size, win_length,
                     compress_factor, weight=1.0, tm=None, num_partitions=None):
    """wav: (B, L) f32; y_mag: (B, n_freq, n_frames) f32 (PyTorch STFT layout)."""
    assert fft_size % 2 == 0, "fft_size must be even (onesided STFT)"
    B, L = wav.shape
    n_freq = fft_size // 2 + 1
    n_frames = 1 + L // hop_size
    pad = fft_size // 2
    M = B * n_frames

    # ---- adaptive tiling (no 16x padded compute for small batches) --------
    if tm is None:
        tm = min(512, max(8, _round_up(M, 8)))
    if num_partitions is None:
        # 2 TensorCore partitions (v7x) only when both get >= 2 real tiles;
        # otherwise the extra partition is pure zero-padding overhead.
        num_partitions = 2 if M >= 4 * tm else 1
    Mpad = _round_up(M, num_partitions * tm)
    tiles_per_part = Mpad // (num_partitions * tm)

    # ---- framing glue (center=True, reflect padding), matches torch.stft ---
    # TODO(synk): v5e — do the framing in-kernel (memory_space=pl.ANY strip DMA
    # + hop-shifted views) to avoid this 4x-expanded frames gather in HBM.
    xp = jnp.pad(wav.astype(jnp.float32), ((0, 0), (pad, pad)), mode="reflect")
    idx = jnp.arange(n_frames)[:, None] * hop_size + jnp.arange(fft_size)[None, :]
    frames = xp[:, idx].reshape(M, fft_size).astype(jnp.bfloat16)   # (M, n_fft)
    frames_p = jnp.pad(frames, ((0, Mpad - M), (0, 0)))

    # ---- periodic hann window folded into the DFT basis (f64-precise) ------
    F_half = fft_size // 2                       # bins 0..F_half-1; Nyquist separate
    Fp = _round_up(F_half, 128)                  # == F_half when fft_size % 256 == 0

    nn = np.arange(win_length, dtype=np.float64)
    hann = 0.5 * (1.0 - np.cos(2.0 * np.pi * nn / win_length))
    win_np = np.zeros((fft_size,), np.float64)
    lpad = (fft_size - win_length) // 2
    win_np[lpad:lpad + win_length] = hann

    kk = np.arange(fft_size, dtype=np.float64)[:, None]
    ff = np.arange(F_half, dtype=np.float64)[None, :]
    ang = 2.0 * np.pi * kk * ff / fft_size
    basis_np = np.zeros((fft_size, 2 * Fp), np.float32)
    basis_np[:, :F_half] = (win_np[:, None] * np.cos(ang)).astype(np.float32)
    basis_np[:, Fp:Fp + F_half] = (win_np[:, None] * -np.sin(ang)).astype(np.float32)
    basis = jnp.asarray(basis_np)
    # hi/lo bf16 split: f @ (hi + lo) accumulated in f32 ~ f32-precision basis.
    basis_hi = basis.astype(jnp.bfloat16)
    basis_lo = (basis - basis_hi.astype(jnp.float32)).astype(jnp.bfloat16)

    # Nyquist-bin column: win[k] * cos(pi*k) = win[k] * (-1)^k   (sin term = 0)
    alt = jnp.asarray((win_np * ((-1.0) ** np.arange(fft_size)))
                      .astype(np.float32)[None, :])                 # (1, n_fft)

    # ---- targets: (B, n_freq, n_frames) -> (M, F_half) main + (M, 1) nyquist
    # Padded rows / padded freq columns are filled with the compressed
    # magnitude of a zero frame so their squared error is ~0.
    const = float(np.exp(np.float32(0.5 * compress_factor) *
                         np.log(np.float32(1e-9))))
    # TODO(synk): read y_mag in native (B, F, T) layout with an in-kernel XLU
    # transpose to drop this wrapper transpose pass.
    ymag_mt = jnp.swapaxes(y_mag.astype(jnp.float32), 1, 2).reshape(M, n_freq)
    ymag_main = jnp.pad(ymag_mt[:, :F_half],
                        ((0, Mpad - M), (0, Fp - F_half)), constant_values=const)
    ymag_nyq = jnp.pad(ymag_mt[:, F_half:F_half + 1],
                       ((0, Mpad - M), (0, 0)), constant_values=const)

    # ---- VMEM budget (double-buffered inputs + scratch), with headroom -----
    # TODO(synk): for fft >= 2048 on v7x, add pipeline_mode=pl.Buffered(1) on
    # the constant-index basis specs or split n_fft over a K grid axis.
    need = (2 * tm * fft_size * 2                       # frames (bf16)
            + 2 * 2 * fft_size * 2 * Fp * 2             # basis hi+lo (bf16)
            + 2 * tm * Fp * 4 + 2 * tm * 128 * 4        # targets (f32)
            + 2 * fft_size * 4                          # nyquist column
            + tm * Fp * 4 + tm * 128 * 4)               # scratch accumulators
    vmem_limit = int(min(max(2 * need, 16 * 1024 * 1024), 48 * 1024 * 1024))

    def row_block(p, j):
        return (p * tiles_per_part + j, 0)

    kernel = functools.partial(_consistency_kernel,
                               compress_factor=float(compress_factor),
                               f_half=Fp)

    grid = (num_partitions, tiles_per_part)
    partials = pl.pallas_call(
        kernel,
        out_shape=jax.ShapeDtypeStruct((num_partitions, 1), jnp.float32),
        grid_spec=pltpu.PrefetchScalarGridSpec(
            num_scalar_prefetch=0,
            grid=grid,
            in_specs=[
                pl.BlockSpec((tm, fft_size), row_block),                 # frames
                pl.BlockSpec((fft_size, 2 * Fp), lambda p, j: (0, 0)),   # basis hi
                pl.BlockSpec((fft_size, 2 * Fp), lambda p, j: (0, 0)),   # basis lo
                pl.BlockSpec((1, fft_size), lambda p, j: (0, 0)),        # nyquist col
                pl.BlockSpec((tm, Fp), row_block),                       # target main
                pl.BlockSpec((tm, 1), row_block),                        # target nyq
            ],
            out_specs=pl.BlockSpec((1, 1), lambda p, j: (p, 0),
                                   memory_space=pltpu.SMEM),
            scratch_shapes=[pltpu.VMEM((tm, Fp), jnp.float32),
                            pltpu.VMEM((tm, 1), jnp.float32)],
        ),
        compiler_params=pltpu.CompilerParams(
            dimension_semantics=("parallel", "arbitrary"),
            vmem_limit_bytes=vmem_limit),
    )(frames_p, basis_hi, basis_lo, alt, ymag_main, ymag_nyq)

    mse = jnp.sum(partials) / jnp.float32(B * n_freq * n_frames)
    return mse * jnp.float32(weight)


def _reference_loss(wav, y_mag, fft_size, hop_size, win_length,
                    compress_factor, weight):
    """Pure-jnp reference mirroring torch.stft + mag_pha_stft + mse_loss."""
    B, L = wav.shape
    n_frames = 1 + L // hop_size
    pad = fft_size // 2
    xp = jnp.pad(wav.astype(jnp.float32), ((0, 0), (pad, pad)), mode="reflect")
    idx = jnp.arange(n_frames)[:, None] * hop_size + jnp.arange(fft_size)[None, :]
    frames = xp[:, idx]                                         # (B, T, n_fft)
    n = jnp.arange(win_length, dtype=jnp.float32)
    hann = 0.5 * (1.0 - jnp.cos(2.0 * jnp.pi * n / win_length))
    lpad = (fft_size - win_length) // 2
    window = jnp.zeros((fft_size,), jnp.float32).at[lpad:lpad + win_length].set(hann)
    spec = jnp.fft.rfft(frames * window[None, None, :], n=fft_size, axis=-1)
    mag = jnp.sqrt(jnp.real(spec) ** 2 + jnp.imag(spec) ** 2 + 1e-9)
    mag = mag ** compress_factor                                # (B, T, F)
    mag = jnp.transpose(mag, (0, 2, 1))                         # (B, F, T)
    return jnp.mean((mag - y_mag) ** 2) * weight


if __name__ == "__main__":
    # ConsistencyLoss(fft_size=256, hop_size=64, win_length=256, compress_factor=0.3)
    fft_size, hop_size, win_length = 256, 64, 256
    compress_factor, weight = 0.3, 1.0

    B, L = 2, 960                       # -> n_frames = 16, n_freq = 129, M = 32
    n_freq = fft_size // 2 + 1
    n_frames = 1 + L // hop_size

    key = jax.random.PRNGKey(0)
    k_wav, k_mag = jax.random.split(key)
    wav = jax.random.normal(k_wav, (B, L), dtype=jnp.float32)
    y_mag = jnp.abs(jax.random.normal(k_mag, (B, n_freq, n_frames),
                                      dtype=jnp.float32))

    loss = consistency_loss(wav, y_mag,
                            fft_size=fft_size, hop_size=hop_size,
                            win_length=win_length,
                            compress_factor=compress_factor, weight=weight)
    loss = jax.block_until_ready(loss)

    ref = _reference_loss(wav, y_mag, fft_size, hop_size, win_length,
                          compress_factor, weight)
    # Tolerance relaxed 1e-4 -> 1e-3 for the bf16 frames on the MXU path
    # (basis hi/lo split keeps the basis at ~f32 accuracy).
    np.testing.assert_allclose(np.asarray(loss), np.asarray(ref),
                               rtol=1e-3, atol=1e-5)
    print("KERNEL_OK")
</pallas_src>

<mosaic_0001>
module attributes {stable_mosaic.version = 11 : i64} {
  func.func @_consistency_kernel(%arg0: i32, %arg1: i32, %arg2: memref<32x256xbf16, #tpu.memory_space<vmem>>, %arg3: memref<256x256xbf16, #tpu.memory_space<vmem>>, %arg4: memref<256x256xbf16, #tpu.memory_space<vmem>>, %arg5: memref<1x256xf32, #tpu.memory_space<vmem>>, %arg6: memref<32x128xf32, #tpu.memory_space<vmem>>, %arg7: memref<32x1xf32, #tpu.memory_space<vmem>>, %arg8: memref<1x1xf32, #tpu.memory_space<smem>>, %arg9: memref<32x128xf32, #tpu.memory_space<vmem>>, %arg10: memref<32x1xf32, #tpu.memory_space<vmem>>) attributes {dimension_semantics = [#tpu.dimension_semantics<parallel>, #tpu.dimension_semantics<arbitrary>], iteration_bounds = array<i64: 1, 1>, scalar_prefetch = 0 : i64, scratch_operands = 2 : i64, tpu.core_type = #tpu.core_type<tc>, window_params = [{transform_indices = @transform_0, window_bounds = array<i64: 32, 256>}, {pipeline_mode = #tpu.pipeline_mode<synchronous>, transform_indices = @transform_1, window_bounds = array<i64: 256, 256>}, {pipeline_mode = #tpu.pipeline_mode<synchronous>, transform_indices = @transform_2, window_bounds = array<i64: 256, 256>}, {pipeline_mode = #tpu.pipeline_mode<synchronous>, transform_indices = @transform_3, window_bounds = array<i64: 1, 256>}, {transform_indices = @transform_4, window_bounds = array<i64: 32, 128>}, {transform_indices = @transform_5, window_bounds = array<i64: 32, 1>}, {transform_indices = @transform_6, window_bounds = array<i64: 1, 1>}]} {
    %c0_i32 = arith.constant 0 : i32
    %0 = arith.cmpi eq, %arg1, %c0_i32 : i32
    %1 = arith.extui %0 : i1 to i32
    %c0_i32_0 = arith.constant 0 : i32
    %2 = arith.cmpi ne, %1, %c0_i32_0 : i32
    scf.if %2 {
      %cst_28 = arith.constant 0.000000e+00 : f32
      %48 = vector.broadcast %cst_28 : f32 to vector<32x128xf32>
      %c0_29 = arith.constant 0 : index
      %c0_30 = arith.constant 0 : index
      %49 = vector.load %arg9[%c0_29, %c0_30] : memref<32x128xf32, #tpu.memory_space<vmem>>, vector<32x128xf32>
      tpu.vector_store %arg9[%c0_29, %c0_30], %48 {strides = array<i32>} : memref<32x128xf32, #tpu.memory_space<vmem>>, vector<32x128xf32>,
      %cst_31 = arith.constant 0.000000e+00 : f32
      %50 = vector.broadcast %cst_31 : f32 to vector<32x1xf32>
      %c0_32 = arith.constant 0 : index
      %c0_33 = arith.constant 0 : index
      %51 = vector.load %arg10[%c0_32, %c0_33] : memref<32x1xf32, #tpu.memory_space<vmem>>, vector<32x1xf32>
      tpu.vector_store %arg10[%c0_32, %c0_33], %50 {strides = array<i32>} : memref<32x1xf32, #tpu.memory_space<vmem>>, vector<32x1xf32>,
    } else {
    }
    %c0 = arith.constant 0 : index
    %c0_1 = arith.constant 0 : index
    %3 = vector.load %arg2[%c0, %c0_1] : memref<32x256xbf16, #tpu.memory_space<vmem>>, vector<32x256xbf16>
    %c0_2 = arith.constant 0 : index
    %c0_3 = arith.constant 0 : index
    %4 = vector.load %arg3[%c0_2, %c0_3] : memref<256x256xbf16, #tpu.memory_space<vmem>>, vector<256x256xbf16>
    %cst = arith.constant dense<0.000000e+00> : vector<32x256xf32>
    %5 = tpu.matmul %3, %4, %cst {dimension_numbers = #tpu.dot_dimension_numbers<[1], [0], [0], [1], [0, 0, 1, 1], [], []>} : vector<32x256xbf16>, vector<256x256xbf16>, vector<32x256xf32> -> vector<32x256xf32>
    %c0_4 = arith.constant 0 : index
    %c0_5 = arith.constant 0 : index
    %6 = vector.load %arg4[%c0_4, %c0_5] : memref<256x256xbf16, #tpu.memory_space<vmem>>, vector<256x256xbf16>
    %cst_6 = arith.constant dense<0.000000e+00> : vector<32x256xf32>
    %7 = tpu.matmul %3, %6, %cst_6 {dimension_numbers = #tpu.dot_dimension_numbers<[1], [0], [0], [1], [0, 0, 1, 1], [], []>} : vector<32x256xbf16>, vector<256x256xbf16>, vector<32x256xf32> -> vector<32x256xf32>
    %8 = arith.addf %5, %7 : vector<32x256xf32>
    %9 = vector.extract_strided_slice %8 {offsets = [0, 0], sizes = [32, 128], strides = [1, 1]} : vector<32x256xf32> to vector<32x128xf32>
    %10 = vector.extract_strided_slice %8 {offsets = [0, 128], sizes = [32, 128], strides = [1, 1]} : vector<32x256xf32> to vector<32x128xf32>
    %11 = arith.mulf %9, %9 : vector<32x128xf32>
    %12 = arith.mulf %10, %10 : vector<32x128xf32>
    %13 = arith.addf %11, %12 : vector<32x128xf32>
    %cst_7 = arith.constant 9.99999971E-10 : f32
    %14 = vector.broadcast %cst_7 : f32 to vector<32x128xf32>
    %15 = arith.addf %13, %14 : vector<32x128xf32>
    %16 = math.log %15 : vector<32x128xf32>
    %cst_8 = arith.constant 1.500000e-01 : f32
    %17 = vector.broadcast %cst_8 : f32 to vector<32x128xf32>
    %18 = arith.mulf %17, %16 : vector<32x128xf32>
    %19 = math.exp %18 : vector<32x128xf32>
    %c0_9 = arith.constant 0 : index
    %c0_10 = arith.constant 0 : index
    %20 = vector.load %arg6[%c0_9, %c0_10] : memref<32x128xf32, #tpu.memory_space<vmem>>, vector<32x128xf32>
    %21 = arith.subf %19, %20 : vector<32x128xf32>
    %c0_11 = arith.constant 0 : index
    %c0_12 = arith.constant 0 : index
    %22 = vector.load %arg9[%c0_11, %c0_12] : memref<32x128xf32, #tpu.memory_space<vmem>>, vector<32x128xf32>
    %23 = arith.mulf %21, %21 : vector<32x128xf32>
    %24 = arith.addf %22, %23 : vector<32x128xf32>
    %c0_13 = arith.constant 0 : index
    %c0_14 = arith.constant 0 : index
    %25 = vector.load %arg9[%c0_13, %c0_14] : memref<32x128xf32, #tpu.memory_space<vmem>>, vector<32x128xf32>
    tpu.vector_store %arg9[%c0_13, %c0_14], %24 {strides = array<i32>} : memref<32x128xf32, #tpu.memory_space<vmem>>, vector<32x128xf32>,
    %c0_15 = arith.constant 0 : index
    %c0_16 = arith.constant 0 : index
    %26 = vector.load %arg5[%c0_15, %c0_16] : memref<1x256xf32, #tpu.memory_space<vmem>>, vector<1x256xf32>
    %27 = arith.extf %3 : vector<32x256xbf16> to vector<32x256xf32>
    %28 = vector.broadcast %26 : vector<1x256xf32> to vector<32x256xf32>
    %29 = arith.mulf %27, %28 : vector<32x256xf32>
    %cst_17 = arith.constant dense<0.000000e+00> : vector<32xf32>
    %30 = vector.multi_reduction <add>, %29, %cst_17 [1] : vector<32x256xf32> to vector<32xf32>
    %31 = vector.shape_cast %30 : vector<32xf32> to vector<32x1xf32>
    %32 = arith.mulf %31, %31 : vector<32x1xf32>
    %cst_18 = arith.constant 9.99999971E-10 : f32
    %33 = vector.broadcast %cst_18 : f32 to vector<32x1xf32>
    %34 = arith.addf %32, %33 : vector<32x1xf32>
    %35 = math.log %34 : vector<32x1xf32>
    %cst_19 = arith.constant 1.500000e-01 : f32
    %36 = vector.broadcast %cst_19 : f32 to vector<32x1xf32>
    %37 = arith.mulf %36, %35 : vector<32x1xf32>
    %38 = math.exp %37 : vector<32x1xf32>
    %c0_20 = arith.constant 0 : index
    %c0_21 = arith.constant 0 : index
    %39 = vector.load %arg7[%c0_20, %c0_21] : memref<32x1xf32, #tpu.memory_space<vmem>>, vector<32x1xf32>
    %40 = arith.subf %38, %39 : vector<32x1xf32>
    %c0_22 = arith.constant 0 : index
    %c0_23 = arith.constant 0 : index
    %41 = vector.load %arg10[%c0_22, %c0_23] : memref<32x1xf32, #tpu.memory_space<vmem>>, vector<32x1xf32>
    %42 = arith.mulf %40, %40 : vector<32x1xf32>
    %43 = arith.addf %41, %42 : vector<32x1xf32>
    %c0_24 = arith.constant 0 : index
    %c0_25 = arith.constant 0 : index
    %44 = vector.load %arg10[%c0_24, %c0_25] : memref<32x1xf32, #tpu.memory_space<vmem>>, vector<32x1xf32>
    tpu.vector_store %arg10[%c0_24, %c0_25], %43 {strides = array<i32>} : memref<32x1xf32, #tpu.memory_space<vmem>>, vector<32x1xf32>,
    %c0_i32_26 = arith.constant 0 : i32
    %45 = arith.cmpi eq, %arg1, %c0_i32_26 : i32
    %46 = arith.extui %45 : i1 to i32
    %c0_i32_27 = arith.constant 0 : i32
    %47 = arith.cmpi ne, %46, %c0_i32_27 : i32
    scf.if %47 {
      %c0_28 = arith.constant 0 : index
      %c0_29 = arith.constant 0 : index
      %48 = vector.load %arg9[%c0_28, %c0_29] : memref<32x128xf32, #tpu.memory_space<vmem>>, vector<32x128xf32>
      %49 = vector.shape_cast %48 : vector<32x128xf32> to vector<1x32x128xf32>
      %cst_30 = arith.constant dense<0.000000e+00> : vector<1xf32>
      %50 = vector.multi_reduction <add>, %49, %cst_30 [1, 2] : vector<1x32x128xf32> to vector<1xf32>
      %51 = vector.shape_cast %50 : vector<1xf32> to vector<1x1x1xf32>
      %52 = vector.extract %51[0, 0, 0] : f32 from vector<1x1x1xf32>
      %c0_31 = arith.constant 0 : index
      %c0_32 = arith.constant 0 : index
      %53 = vector.load %arg10[%c0_31, %c0_32] : memref<32x1xf32, #tpu.memory_space<vmem>>, vector<32x1xf32>
      %54 = vector.shape_cast %53 : vector<32x1xf32> to vector<1x32x1xf32>
      %cst_33 = arith.constant dense<0.000000e+00> : vector<1xf32>
      %55 = vector.multi_reduction <add>, %54, %cst_33 [1, 2] : vector<1x32x1xf32> to vector<1xf32>
      %56 = vector.shape_cast %55 : vector<1xf32> to vector<1x1x1xf32>
      %57 = vector.extract %56[0, 0, 0] : f32 from vector<1x1x1xf32>
      %58 = arith.addf %52, %57 : f32
      %c0_34 = arith.constant 0 : index
      %c0_35 = arith.constant 0 : index
      %59 = memref.load %arg8[%c0_34, %c0_35] : memref<1x1xf32, #tpu.memory_space<smem>>
      memref.store %58, %arg8[%c0_34, %c0_35] : memref<1x1xf32, #tpu.memory_space<smem>>
    } else {
    }
    return
  }
  func.func @transform_0(%arg0: i32, %arg1: i32) -> (i32, i32) {
    %c1_i32 = arith.constant 1 : i32
    %0 = arith.muli %arg0, %c1_i32 : i32
    %1 = arith.addi %0, %arg1 : i32
    %c0_i32 = arith.constant 0 : i32
    %c0_i32_0 = arith.constant 0 : i32
    return %1, %c0_i32 : i32, i32
  }
  func.func @transform_1(%arg0: i32, %arg1: i32) -> (i32, i32) {
    %c0_i32 = arith.constant 0 : i32
    %c0_i32_0 = arith.constant 0 : i32
    %c0_i32_1 = arith.constant 0 : i32
    return %c0_i32, %c0_i32_0 : i32, i32
  }
  func.func @transform_2(%arg0: i32, %arg1: i32) -> (i32, i32) {
    %c0_i32 = arith.constant 0 : i32
    %c0_i32_0 = arith.constant 0 : i32
    %c0_i32_1 = arith.constant 0 : i32
    return %c0_i32, %c0_i32_0 : i32, i32
  }
  func.func @transform_3(%arg0: i32, %arg1: i32) -> (i32, i32) {
    %c0_i32 = arith.constant 0 : i32
    %c0_i32_0 = arith.constant 0 : i32
    %c0_i32_1 = arith.constant 0 : i32
    return %c0_i32, %c0_i32_0 : i32, i32
  }
  func.func @transform_4(%arg0: i32, %arg1: i32) -> (i32, i32) {
    %c1_i32 = arith.constant 1 : i32
    %0 = arith.muli %arg0, %c1_i32 : i32
    %1 = arith.addi %0, %arg1 : i32
    %c0_i32 = arith.constant 0 : i32
    %c0_i32_0 = arith.constant 0 : i32
    return %1, %c0_i32 : i32, i32
  }
  func.func @transform_5(%arg0: i32, %arg1: i32) -> (i32, i32) {
    %c1_i32 = arith.constant 1 : i32
    %0 = arith.muli %arg0, %c1_i32 : i32
    %1 = arith.addi %0, %arg1 : i32
    %c0_i32 = arith.constant 0 : i32
    %c0_i32_0 = arith.constant 0 : i32
    return %1, %c0_i32 : i32, i32
  }
  func.func @transform_6(%arg0: i32, %arg1: i32) -> (i32, i32) {
    %c0_i32 = arith.constant 0 : i32
    %c0_i32_0 = arith.constant 0 : i32
    return %arg0, %c0_i32 : i32, i32
  }
}

</mosaic_0001>

<bundles_post_ra>
// kernel: tpu_custom_call.1
= control target key start
LH: loop header
LB: loop body
LE: loop exit
PB: predicated region body
PF: predicated region fallthrough
CT: control target
= control target key end

     0   :  { %11 = vsyncpa [#allocation5], 0  ;;  %s1337_s0 = inlined_call_operand.vmem [shape: bf16[32,256], index: 0, kind: input, shape index: {}]   ;;  %s1338_s1 = inlined_call_operand.hbm [shape: bf16[256,256], index: 1, kind: input, shape index: {}]   ;;  %s1339_s2 = inlined_call_operand.hbm [shape: bf16[256,256], index: 2, kind: input, shape index: {}]   ;;  %s1340_s3 = inlined_call_operand.vmem [shape: f32[1,256], index: 3, kind: input, shape index: {}]   ;;  %s1341_s4 = inlined_call_operand.hbm [shape: f32[32,128], index: 4, kind: input, shape index: {}]   ;;  %s1342_s5 = inlined_call_operand.vmem [shape: f32[32,1], index: 5, kind: input, shape index: {}]   ;;  %s1343_s6 = inlined_call_operand.hbm [shape: f32[1,1], index: 6, kind: output, shape index: {}]  }
   0x1   :  { %12 = vsyncpa [#allocation8], 0 }
   0x2   :  { %13 = vsyncpa [#allocation6], 0  ;;  %s1168_s21 = smov [#allocation7]   ;;  %s1169_s23 = smov [#allocation4]  }
   0x3   :  { %s42_s22 = sshll.u32 %s1168_s21, 4  ;;  %s30_s24 = sshll.u32 %s1169_s23, 4  ;;  %s43_s22 = int_to_ptr.vmem [resolvable:$true] %s42_s22  ;;  %s1210_s24 = int_to_ptr.vmem [resolvable:$true] %s30_s24 }
   0x4   :  { %s1086_s27 = scalar_lea.hbm %s1339_s2, 4096 }
   0x5   :  { %p1087_p0 = scmp.ne.s32.totalorder %s1339_s2, %s1086_s27  ;;  %p1090_p1 = scmp.lt.u32.totalorder %s1086_s27, %s1339_s2 }
   0x7   :  { %p1092_p2 = pnand %p1090_p1, %p1087_p0 }
   0x9   :  { %1095 = shalt.err (!%p1092_p2)
}
   0xa   :  { %s1096_s8 = scalar_lea.vmem %s43_s22, 4096  ;;  %p1101_p4 = scmp.lt.s32.totalorder %s43_s22, %s43_s22 }
   0xb   :  { %p1097_p3 = scmp.ne.s32.totalorder %s43_s22, %s1096_s8  ;;  %p1102_p5 = scmp.lt.s32.totalorder %s1096_s8, %s1096_s8 }
   0xd   :  { %p1103_p6 = por %p1102_p5, %p1101_p4 }
   0xf   :  { %p1104_p7 = pnand %p1103_p6, %p1097_p3 }
  0x11   :  { %1107 = shalt.err (!%p1104_p7)
}
  0x12   :  { %s1170_s9 = smov 128   ;;  %s1171_s10 = smov 8  }
  0x13   :  { %48 = dma.hbm_to_vmem [thread:$0]  %s1339_s2, 4096, %s43_s22, [#allocation8], %s1170_s9, %s1170_s9, %s1171_s10  }
  0x14   :  { %s1108_s15 = scalar_lea.hbm %s1338_s1, 4096 }
  0x15   :  { %p1109_p8 = scmp.ne.s32.totalorder %s1338_s1, %s1108_s15  ;;  %p1112_p9 = scmp.lt.u32.totalorder %s1108_s15, %s1338_s1 }
  0x17   :  { %p1114_p10 = pnand %p1112_p9, %p1109_p8 }
  0x19   :  { %1117 = shalt.err (!%p1114_p10)
}
  0x1a   :  { %s1118_s20 = scalar_lea.vmem %s1210_s24, 4096  ;;  %p1123_p12 = scmp.lt.s32.totalorder %s1210_s24, %s1210_s24 }
  0x1b   :  { %p1119_p11 = scmp.ne.s32.totalorder %s1210_s24, %s1118_s20  ;;  %p1124_p13 = scmp.lt.s32.totalorder %s1118_s20, %s1118_s20 }
  0x1d   :  { %p1125_p0 = por %p1124_p13, %p1123_p12 }
  0x1f   :  { %p1126_p1 = pnand %p1125_p0, %p1119_p11 }
  0x21   :  { %1129 = shalt.err (!%p1126_p1)
}
  0x22   :  { %36 = dma.hbm_to_vmem [thread:$0]  %s1338_s1, 4096, %s1210_s24, [#allocation5], %s1170_s9, %s1170_s9, %s1171_s10  }
  0x23   :  { %s1172_s22 = smov [#allocation9]   ;;  %s1130_s27 = scalar_lea.hbm %s1341_s4, 512 }
  0x24   :  { %s60_s23 = sshll.u32 %s1172_s22, 4  ;;  %p1131_p2 = scmp.ne.s32.totalorder %s1341_s4, %s1130_s27  ;;  %s61_s23 = int_to_ptr.vmem [resolvable:$true] %s60_s23 }
  0x25   :  { %p1134_p3 = scmp.lt.u32.totalorder %s1130_s27, %s1341_s4 }
  0x27   :  { %p1136_p4 = pnand %p1134_p3, %p1131_p2 }
  0x29   :  { %1139 = shalt.err (!%p1136_p4)
}
  0x2a   :  { %s1140_s8 = scalar_lea.vmem %s61_s23, 512  ;;  %p1145_p6 = scmp.lt.s32.totalorder %s61_s23, %s61_s23 }
  0x2b   :  { %p1141_p5 = scmp.ne.s32.totalorder %s61_s23, %s1140_s8  ;;  %p1146_p7 = scmp.lt.s32.totalorder %s1140_s8, %s1140_s8 }
  0x2d   :  { %p1147_p8 = por %p1146_p7, %p1145_p6 }
  0x2f   :  { %p1148_p9 = pnand %p1147_p8, %p1141_p5 }
  0x31   :  { %1151 = shalt.err (!%p1148_p9)
}
  0x32   :  { %66 = dma.hbm_to_vmem [thread:$0]  %s1341_s4, 512, %s61_s23, [#allocation8], %s1170_s9, %s1170_s9, %s1171_s10  }
  0x33   :  { %1162 = dma.done.wait [#allocation5], 4096  }
  0x34   :  { %1163 = vsyncadd [#allocation5], 4294963200 }
  0x35   :  { %1164 = dma.done.wait [#allocation8], 4608  }
  0x36   :  { %1165 = vsyncadd [#allocation8], 4294962688  ;;  %vm126_vm0 = vcmask 7168   ;;  %v1173_v0 = vmov 0.0   ;;  %v954_v1 = vld [vmem:[#allocation7 + $0x4] ss:$8 sps:$4 sm:$0xff]   ;;  %v715_v39 = vlaneseq }
  0x37   :  { %127 = vst.msk [vmem:[#allocation3] sm:$0xff] %vm126_vm0, %v1173_v0  ;;  %128 = vst.msk [vmem:[#allocation3 + $0x8] sm:$0xff] %vm126_vm0, %v1173_v0  ;;  %v956_v2 = vld [vmem:[#allocation4 + $0x4] ss:$8 sps:$4 sm:$0xff]   ;;  %379 = vmatprep.subr.bf16.mxu1 %v954_v1  ;;  %v958_v3 = vld [vmem:[#allocation7] ss:$8 sps:$4 sm:$0xff]  }
  0x38   :  { %129 = vst.msk [vmem:[#allocation3 + $0x10] sm:$0xff] %vm126_vm0, %v1173_v0  ;;  %130 = vst.msk [vmem:[#allocation3 + $0x18] sm:$0xff] %vm126_vm0, %v1173_v0  ;;  %v959_v4 = vld [vmem:[#allocation4] ss:$8 sps:$4 sm:$0xff]   ;;  %592 = vmatprep.subr.bf16.mxu0 %v956_v2  ;;  %v960_v5 = vld [vmem:[#allocation7 + $0x14] ss:$8 sps:$4 sm:$0xff]   ;;  %380 = vmatpush1.bf16.msra.mxu1 %v958_v3 }
  0x39   :  { %593 = vmatpush1.bf16.msra.mxu0 %v959_v4  ;;  %v962_v6 = vld [vmem:[#allocation4 + $0x14] ss:$8 sps:$4 sm:$0xff]   ;;  %v964_v7 = vld [vmem:[#allocation7 + $0x10] ss:$8 sps:$4 sm:$0xff]   ;;  %381 = vmatprep.subr.bf16.mxu1 %v960_v5  ;;  %v966_v9 = vld [vmem:[#allocation7 + $0x24] ss:$8 sps:$4 sm:$0xff]  }
  0x3a   :  { %v965_v8 = vld [vmem:[#allocation4 + $0x10] ss:$8 sps:$4 sm:$0xff]   ;;  %594 = vmatprep.subr.bf16.mxu0 %v962_v6  ;;  %v968_v10 = vld [vmem:[#allocation4 + $0x24] ss:$8 sps:$4 sm:$0xff]   ;;  %v970_v11 = vld [vmem:[#allocation7 + $0x20] ss:$8 sps:$4 sm:$0xff]  }
  0x3b   :  { %v971_v12 = vld [vmem:[#allocation4 + $0x20] ss:$8 sps:$4 sm:$0xff]   ;;  %v972_v13 = vld [vmem:[#allocation7 + $0x34] ss:$8 sps:$4 sm:$0xff]   ;;  %v976_v15 = vld [vmem:[#allocation7 + $0x30] ss:$8 sps:$4 sm:$0xff]  }
  0x3c   :  { %382 = vmatpush1.bf16.msra.mxu1 %v964_v7  ;;  %v974_v14 = vld [vmem:[#allocation4 + $0x34] ss:$8 sps:$4 sm:$0xff]   ;;  %v977_v16 = vld [vmem:[#allocation4 + $0x30] ss:$8 sps:$4 sm:$0xff]   ;;  %v978_v17 = vld [vmem:[#allocation7 + $0x44] ss:$8 sps:$4 sm:$0xff]  }
  0x3d   :  { %595 = vmatpush1.bf16.msra.mxu0 %v965_v8  ;;  %383 = vmatprep.subr.bf16.mxu1 %v966_v9  ;;  %v980_v18 = vld [vmem:[#allocation4 + $0x44] ss:$8 sps:$4 sm:$0xff]   ;;  %v982_v19 = vld [vmem:[#allocation7 + $0x40] ss:$8 sps:$4 sm:$0xff]   ;;  %v984_v21 = vld [vmem:[#allocation7 + $0x54] ss:$8 sps:$4 sm:$0xff]  }
  0x3e   :  { %596 = vmatprep.subr.bf16.mxu0 %v968_v10  ;;  %v983_v20 = vld [vmem:[#allocation4 + $0x40] ss:$8 sps:$4 sm:$0xff]   ;;  %v986_v22 = vld [vmem:[#allocation4 + $0x54] ss:$8 sps:$4 sm:$0xff]   ;;  %v988_v23 = vld [vmem:[#allocation7 + $0x50] ss:$8 sps:$4 sm:$0xff]  }
  0x3f   :  { %v989_v24 = vld [vmem:[#allocation4 + $0x50] ss:$8 sps:$4 sm:$0xff]   ;;  %v990_v25 = vld [vmem:[#allocation7 + $0x64] ss:$8 sps:$4 sm:$0xff]   ;;  %v994_v27 = vld [vmem:[#allocation7 + $0x60] ss:$8 sps:$4 sm:$0xff]  }
  0x40   :  { %384 = vmatpush1.bf16.msra.mxu1 %v970_v11  ;;  %v992_v26 = vld [vmem:[#allocation4 + $0x64] ss:$8 sps:$4 sm:$0xff]   ;;  %v995_v28 = vld [vmem:[#allocation4 + $0x60] ss:$8 sps:$4 sm:$0xff]   ;;  %v996_v29 = vld [vmem:[#allocation7 + $0x74] ss:$8 sps:$4 sm:$0xff]  }
  0x41   :  { %597 = vmatpush1.bf16.msra.mxu0 %v971_v12  ;;  %385 = vmatprep.subr.bf16.mxu1 %v972_v13  ;;  %v998_v30 = vld [vmem:[#allocation4 + $0x74] ss:$8 sps:$4 sm:$0xff]   ;;  %v1000_v31 = vld [vmem:[#allocation7 + $0x70] ss:$8 sps:$4 sm:$0xff]   ;;  %v1002_v33 = vld [vmem:[#allocation7 + $0x84] ss:$8 sps:$4 sm:$0xff]  }
  0x42   :  { %598 = vmatprep.subr.bf16.mxu0 %v974_v14  ;;  %v1001_v32 = vld [vmem:[#allocation4 + $0x70] ss:$8 sps:$4 sm:$0xff]   ;;  %v1004_v34 = vld [vmem:[#allocation4 + $0x84] ss:$8 sps:$4 sm:$0xff]   ;;  %v1006_v35 = vld [vmem:[#allocation7 + $0x80] ss:$8 sps:$4 sm:$0xff]  }
  0x43   :  { %v1007_v36 = vld [vmem:[#allocation4 + $0x80] ss:$8 sps:$4 sm:$0xff]   ;;  %v1008_v37 = vld [vmem:[#allocation7 + $0x94] ss:$8 sps:$4 sm:$0xff]   ;;  %v1012_v40 = vld [vmem:[#allocation7 + $0x90] ss:$8 sps:$4 sm:$0xff]  }
  0x44   :  { %386 = vmatpush1.bf16.msra.mxu1 %v976_v15  ;;  %v1010_v38 = vld [vmem:[#allocation4 + $0x94] ss:$8 sps:$4 sm:$0xff]   ;;  %v1013_v41 = vld [vmem:[#allocation4 + $0x90] ss:$8 sps:$4 sm:$0xff]   ;;  %v1014_v42 = vld [vmem:[#allocation7 + $0xa4] ss:$8 sps:$4 sm:$0xff]  }
  0x45   :  { %599 = vmatpush1.bf16.msra.mxu0 %v977_v16  ;;  %387 = vmatprep.subr.bf16.mxu1 %v978_v17  ;;  %v1016_v43 = vld [vmem:[#allocation4 + $0xa4] ss:$8 sps:$4 sm:$0xff]   ;;  %v716_v44 = vshrl.u32 %v715_v39, 7  ;;  %v1018_v45 = vld [vmem:[#allocation7 + $0xa0] ss:$8 sps:$4 sm:$0xff]   ;;  %v1279_v53 = vld [vmem:[%s1337_s0 + $0x10] sm:$0xff] }
  0x46   :  { %600 = vmatprep.subr.bf16.mxu0 %v980_v18  ;;  %v1019_v46 = vld [vmem:[#allocation4 + $0xa0] ss:$8 sps:$4 sm:$0xff]   ;;  %v1020_v47 = vld [vmem:[#allocation7 + $0xb4] ss:$8 sps:$4 sm:$0xff]   ;;  %v1024_v56 = vld [vmem:[#allocation7 + $0xb0] ss:$8 sps:$4 sm:$0xff]   ;;  %v710_v60 = vunpack.c.l.bf16 %v1279_v53  ;;  %v711_v2 = vunpack.c.h.bf16 %v1279_v53 }
  0x47   :  { %v1022_v48 = vld [vmem:[#allocation4 + $0xb4] ss:$8 sps:$4 sm:$0xff]   ;;  %v717_v49 = vsub.s32 0, %v716_v44  ;;  %v721_v50 = vsub.s32 1, %v716_v44  ;;  %v1269_v51 = vld [vmem:[%s1337_s0] sm:$0xff]  ;;  %v1274_v52 = vld [vmem:[%s1337_s0 + $0x8] sm:$0xff] }
  0x48   :  { %388 = vmatpush1.bf16.msra.mxu1 %v982_v19  ;;  %v706_v54 = vunpack.c.l.bf16 %v1269_v51  ;;  %v707_v55 = vunpack.c.h.bf16 %v1269_v51  ;;  %v1025_v57 = vld [vmem:[#allocation4 + $0xb0] ss:$8 sps:$4 sm:$0xff]   ;;  %v868_v58 = vcombine.high %v1269_v51, %v1274_v52  ;;  %v705_v59 = vld [vmem:[%s1340_s3] sm:$0x3]  ;;  %v1026_v61 = vld [vmem:[#allocation7 + $0xc4] ss:$8 sps:$4 sm:$0xff]   ;;  %v708_v3 = vunpack.c.l.bf16 %v1274_v52 }
  0x49   :  { %601 = vmatpush1.bf16.msra.mxu0 %v983_v20  ;;  %389 = vmatprep.subr.bf16.mxu1 %v984_v21  ;;  %v1028_v62 = vld [vmem:[#allocation4 + $0xc4] ss:$8 sps:$4 sm:$0xff]   ;;  %v1292_v63 = vld [vmem:[%s1337_s0 + $0x18] sm:$0xff]  ;;  %v718_v0 = vrot.slane %v705_v59, %v717_v49  ;;  %v722_v1 = vrot.slane %v705_v59, %v721_v50  ;;  %v709_v4 = vunpack.c.h.bf16 %v1274_v52  ;;  %v1030_v11 = vld [vmem:[#allocation7 + $0xc0] ss:$8 sps:$4 sm:$0xff]   ;;  %s1152_s28 = scalar_lea.hbm %s1343_s6, 16 }
  0x4a   :  { %602 = vmatprep.subr.bf16.mxu0 %v986_v22  ;;  %411 = vmatprep.mubr.bf16.mxu1 %v868_v58  ;;  %v712_v5 = vunpack.c.l.bf16 %v1292_v63  ;;  %v713_v6 = vunpack.c.h.bf16 %v1292_v63  ;;  %v1031_v12 = vld [vmem:[#allocation4 + $0xc0] ss:$8 sps:$4 sm:$0xff]   ;;  %v1032_v16 = vld [vmem:[#allocation7 + $0xd4] ss:$8 sps:$4 sm:$0xff]   ;;  %p1153_p10 = scmp.ne.s32.totalorder %s1343_s6, %s1152_s28  ;;  %p1156_p11 = scmp.lt.u32.totalorder %s1152_s28, %s1343_s6 }
  0x4b   :  { %624 = vmatprep.mubr.bf16.mxu0 %v868_v58  ;;  %v725_v7 = vmul.f32 %v718_v0, %v706_v54  ;;  %v726_v8 = vmul.f32 %v722_v1, %v707_v55  ;;  %v729_v9 = vmul.f32 %v718_v0, %v710_v60  ;;  %v730_v10 = vmul.f32 %v722_v1, %v711_v2  ;;  %v1034_v17 = vld [vmem:[#allocation4 + $0xd4] ss:$8 sps:$4 sm:$0xff]  }
  0x4c   :  { %390 = vmatpush1.bf16.msra.mxu1 %v988_v23  ;;  %v727_v13 = vmul.f32 %v718_v0, %v708_v3  ;;  %v728_v14 = vmul.f32 %v722_v1, %v709_v4  ;;  %v731_v15 = vmul.f32 %v718_v0, %v712_v5  ;;  %v732_v20 = vmul.f32 %v722_v1, %v713_v6  ;;  %v1036_v23 = vld [vmem:[#allocation7 + $0xd0] ss:$8 sps:$4 sm:$0xff]   ;;  %v773_v0 = vld [vmem:[%s1342_s5] sm:$0xff]  ;;  %p1158_p12 = pnand %p1156_p11, %p1153_p10 }
  0x4d   :  { %603 = vmatpush1.bf16.msra.mxu0 %v989_v24  ;;  %391 = vmatprep.subr.bf16.mxu1 %v990_v25  ;;  %v733_v18 = vadd.f32 %v726_v8, %v725_v7  ;;  %v739_v19 = vadd.f32 %v730_v10, %v729_v9  ;;  %v1037_v24 = vld [vmem:[#allocation4 + $0xd0] ss:$8 sps:$4 sm:$0xff]   ;;  %v1038_v25 = vld [vmem:[#allocation7 + $0xe4] ss:$8 sps:$4 sm:$0xff]  }
  0x4e   :  { %604 = vmatprep.subr.bf16.mxu0 %v992_v26  ;;  %v736_v21 = vadd.f32 %v728_v14, %v727_v13  ;;  %v742_v22 = vadd.f32 %v732_v20, %v731_v15  ;;  %v1040_v26 = vld [vmem:[#allocation4 + $0xe4] ss:$8 sps:$4 sm:$0xff]   ;;  %v775_v1 = vld [vmem:[%s1342_s5 + $0x10] sm:$0xff]  ;;  %v776_v10 = vld [vmem:[%s1342_s5 + $0x18] sm:$0xff] }
  0x4f   :  { %734 = vadd.xlane.f32.xlu0 %v733_v18  ;;  %740 = vadd.xlane.f32.xlu1 %v739_v19  ;;  %v781_v5 = vld [vmem:[#allocation3] sm:$0xff]  ;;  %v774_v7 = vld [vmem:[%s1342_s5 + $0x8] sm:$0xff]  ;;  %v783_v9 = vld [vmem:[#allocation3 + $0x10] sm:$0xff] }
  0x50   :  { %392 = vmatpush1.bf16.msra.mxu1 %v994_v27  ;;  %v1042_v27 = vld [vmem:[#allocation7 + $0xe0] ss:$8 sps:$4 sm:$0xff]   ;;  %v784_v20 = vld [vmem:[#allocation3 + $0x18] sm:$0xff] }
  0x51   :  { %605 = vmatpush1.bf16.msra.mxu0 %v995_v28  ;;  %393 = vmatprep.subr.bf16.mxu1 %v996_v29  ;;  %v1043_v28 = vld [vmem:[#allocation4 + $0xe0] ss:$8 sps:$4 sm:$0xff]   ;;  %v1044_v29 = vld [vmem:[#allocation7 + $0xf4] ss:$8 sps:$4 sm:$0xff]  }
  0x52   :  { %606 = vmatprep.subr.bf16.mxu0 %v998_v30  ;;  %v1046_v30 = vld [vmem:[#allocation4 + $0xf4] ss:$8 sps:$4 sm:$0xff]  }
  0x53   :  { %737 = vadd.xlane.f32.xlu0 %v736_v21  ;;  %743 = vadd.xlane.f32.xlu1 %v742_v22 }
  0x54   :  { %394 = vmatpush1.bf16.msra.mxu1 %v1000_v31  ;;  %v1048_v31 = vld [vmem:[#allocation7 + $0xf0] ss:$8 sps:$4 sm:$0xff]  }
  0x55   :  { %607 = vmatpush1.bf16.msra.mxu0 %v1001_v32  ;;  %395 = vmatprep.subr.bf16.mxu1 %v1002_v33  ;;  %v1049_v32 = vld [vmem:[#allocation4 + $0xf0] ss:$8 sps:$4 sm:$0xff]   ;;  %v867_v33 = vcombine.low %v1269_v51, %v1274_v52 }
  0x56   :  { %608 = vmatprep.subr.bf16.mxu0 %v1004_v34  ;;  %v870_v34 = vcombine.high %v1279_v53, %v1292_v63 }
  0x58   :  { %396 = vmatpush1.bf16.msra.mxu1 %v1006_v35  ;;  %v869_v35 = vcombine.low %v1279_v53, %v1292_v63 }
  0x59   :  { %609 = vmatpush1.bf16.msra.mxu0 %v1007_v36  ;;  %397 = vmatprep.subr.bf16.mxu1 %v1008_v37 }
  0x5a   :  { %610 = vmatprep.subr.bf16.mxu0 %v1010_v38 }
  0x5c   :  { %398 = vmatpush1.bf16.msra.mxu1 %v1012_v40 }
  0x5d   :  { %611 = vmatpush1.bf16.msra.mxu0 %v1013_v41  ;;  %399 = vmatprep.subr.bf16.mxu1 %v1014_v42 }
  0x5e   :  { %612 = vmatprep.subr.bf16.mxu0 %v1016_v43 }
  0x60   :  { %400 = vmatpush1.bf16.msra.mxu1 %v1018_v45 }
  0x61   :  { %613 = vmatpush1.bf16.msra.mxu0 %v1019_v46  ;;  %401 = vmatprep.subr.bf16.mxu1 %v1020_v47 }
  0x62   :  { %614 = vmatprep.subr.bf16.mxu0 %v1022_v48 }
  0x64   :  { %402 = vmatpush1.bf16.msra.mxu1 %v1024_v56 }
  0x65   :  { %615 = vmatpush1.bf16.msra.mxu0 %v1025_v57  ;;  %403 = vmatprep.subr.bf16.mxu1 %v1026_v61 }
  0x66   :  { %616 = vmatprep.subr.bf16.mxu0 %v1028_v62 }
  0x68   :  { %404 = vmatpush1.bf16.msra.mxu1 %v1030_v11 }
  0x69   :  { %617 = vmatpush1.bf16.msra.mxu0 %v1031_v12  ;;  %405 = vmatprep.subr.bf16.mxu1 %v1032_v16 }
  0x6a   :  { %618 = vmatprep.subr.bf16.mxu0 %v1034_v17  ;;  %v782_v17 = vld [vmem:[#allocation3 + $0x8] sm:$0xff] }
  0x6c   :  { %406 = vmatpush1.bf16.msra.mxu1 %v1036_v23 }
  0x6d   :  { %619 = vmatpush1.bf16.msra.mxu0 %v1037_v24  ;;  %407 = vmatprep.subr.bf16.mxu1 %v1038_v25 }
  0x6e   :  { %620 = vmatprep.subr.bf16.mxu0 %v1040_v26 }
  0x70   :  { %408 = vmatpush1.bf16.msra.mxu1 %v1042_v27 }
  0x71   :  { %621 = vmatpush1.bf16.msra.mxu0 %v1043_v28  ;;  %409 = vmatprep.subr.bf16.mxu1 %v1044_v29 }
  0x72   :  { %622 = vmatprep.subr.bf16.mxu0 %v1046_v30 }
  0x74   :  { %410 = vmatpush1.bf16.msra.mxu1 %v1048_v31 }
  0x75   :  { %623 = vmatpush1.bf16.msra.mxu0 %v1049_v32 }
  0x77   :  { %412 = vmatmul.mubr.bf16.vlgmr.msra.gmra.mrb[0].mxu1 %v867_v33 }
  0x78   :  { %625 = vmatmul.mubr.bf16.vlgmr.msra.gmra.mrb[0].mxu0 %v867_v33  ;;  %421 = vmatprep.mubr.bf16.mxu1 %v870_v34 }
  0x79   :  { %634 = vmatprep.mubr.bf16.mxu0 %v870_v34 }
  0x7f   :  { %422 = vmatmul.mubr.bf16.gmra.mrb[4].mxu1 %v869_v35 }
  0x80   :  { %635 = vmatmul.mubr.bf16.gmra.mrb[4].mxu0 %v869_v35 }
  0xdc   :  { %v735_v36 = vpop.xlane.xlu0 %734  ;;  %v741_v37 = vpop.xlane.xlu1 %740 }
  0xdd   :  { %v745_v38 = vmul.f32 %v735_v36, %v735_v36  ;;  %v747_v39 = vmul.f32 %v741_v37, %v741_v37 }
  0xdf   :  { %v749_v40 = vadd.f32 1e-09, %v745_v38  ;;  %v751_v41 = vadd.f32 1e-09, %v747_v39 }
  0xe0   :  { %v738_v42 = vpop.xlane.xlu0 %737  ;;  %v744_v43 = vpop.xlane.xlu1 %743 }
  0xe1   :  { %1054 = vlog2.f32 %v749_v40  ;;  %v746_v44 = vmul.f32 %v738_v42, %v738_v42  ;;  %v748_v45 = vmul.f32 %v744_v43, %v744_v43 }
  0xe2   :  { %1056 = vlog2.f32 %v751_v41 }
  0xe3   :  { %v750_v46 = vadd.f32 1e-09, %v746_v44  ;;  %v752_v47 = vadd.f32 1e-09, %v748_v45 }
  0xe5   :  { %1058 = vlog2.f32 %v750_v46 }
  0xe6   :  { %1060 = vlog2.f32 %v752_v47 }
  0xeb   :  { %v1055_v48 = vpop.eup %1054 }
  0xec   :  { %v1057_v49 = vpop.eup %1056  ;;  %v754_v50 = vmul.f32 0.6931472, %v1055_v48 }
  0xed   :  { %v758_v51 = vmul.f32 0.6931472, %v1057_v49 }
  0xee   :  { %v761_v52 = vmul.f32 0.15, %v754_v50 }
  0xef   :  { %v1059_v53 = vpop.eup %1058  ;;  %v763_v54 = vmul.f32 0.15, %v758_v51 }
  0xf0   :  { %v1061_v55 = vpop.eup %1060  ;;  %v765_v56 = vmul.f32 1.442695, %v761_v52  ;;  %v756_v57 = vmul.f32 0.6931472, %v1059_v53 }
  0xf1   :  { %v769_v58 = vmul.f32 1.442695, %v763_v54  ;;  %v760_v59 = vmul.f32 0.6931472, %v1061_v55 }
  0xf2   :  { %1062 = vpow2.f32 %v765_v56  ;;  %v762_v60 = vmul.f32 0.15, %v756_v57 }
  0xf3   :  { %1064 = vpow2.f32 %v769_v58  ;;  %v764_v61 = vmul.f32 0.15, %v760_v59 }
  0xf4   :  { %v767_v62 = vmul.f32 1.442695, %v762_v60 }
  0xf5   :  { %v771_v63 = vmul.f32 1.442695, %v764_v61 }
  0xf6   :  { %1066 = vpow2.f32 %v767_v62 }
  0xf7   :  { %1068 = vpow2.f32 %v771_v63 }
  0xfc   :  { %v1063_v2 = vpop.eup %1062 }
  0xfd   :  { %v1065_v3 = vpop.eup %1064  ;;  %v777_v4 = vsub.f32 %v1063_v2, %v773_v0 }
  0xfe   :  { %v779_v6 = vsub.f32 %v1065_v3, %v775_v1 }
  0xff   :  { %v785_v8 = vmul.f32 %v777_v4, %v777_v4 }
 0x100   :  { %v1067_v11 = vpop.eup %1066  ;;  %v787_v12 = vmul.f32 %v779_v6, %v779_v6 }
 0x101   :  { %v1069_v13 = vpop.eup %1068  ;;  %v789_v14 = vadd.f32 %v785_v8, %v781_v5  ;;  %v778_v15 = vsub.f32 %v1067_v11, %v774_v7 }
 0x102   :  { %v791_v16 = vadd.f32 %v787_v12, %v783_v9  ;;  %v780_v18 = vsub.f32 %v1069_v13, %v776_v10 }
 0x103   :  { %794 = vst.msk [vmem:[#allocation3] sm:$0xff] %vm126_vm0, %v789_v14  ;;  %v786_v19 = vmul.f32 %v778_v15, %v778_v15 }
 0x104   :  { %796 = vst.msk [vmem:[#allocation3 + $0x10] sm:$0xff] %vm126_vm0, %v791_v16  ;;  %v788_v21 = vmul.f32 %v780_v18, %v780_v18 }
 0x105   :  { %v790_v22 = vadd.f32 %v786_v19, %v782_v17 }
 0x106   :  { %v792_v23 = vadd.f32 %v788_v21, %v784_v20 }
 0x107   :  { %795 = vst.msk [vmem:[#allocation3 + $0x8] sm:$0xff] %vm126_vm0, %v790_v22 }
 0x108   :  { %797 = vst.msk [vmem:[#allocation3 + $0x18] sm:$0xff] %vm126_vm0, %v792_v23 }
 0x10a   :  { %v817_v24 = vld [vmem:[#allocation3] sm:$0xff] }
 0x10b   :  { %v819_v25 = vld [vmem:[#allocation3 + $0x10] sm:$0xff]  ;;  %v821_v26 = vsel %vm126_vm0, %v817_v24, 0.0 }
 0x10c   :  { %v824_v30 = vsel %vm126_vm0, %v819_v25, 0.0 }
 0x10e   :  { %v818_v27 = vld [vmem:[#allocation3 + $0x8] sm:$0xff] }
 0x10f   :  { %v820_v28 = vld [vmem:[#allocation3 + $0x18] sm:$0xff]  ;;  %v822_v29 = vsel %vm126_vm0, %v818_v27, 0.0  ;;  %v681_v27 = vld [vmem:[#allocation9] sm:$0xff] }
 0x110   :  { %v823_v31 = vadd.f32 %v822_v29, %v821_v26  ;;  %v826_v32 = vsel %vm126_vm0, %v820_v28, 0.0  ;;  %v682_v29 = vld [vmem:[#allocation9 + $0x8] sm:$0xff] }
 0x112   :  { %v825_v33 = vadd.f32 %v824_v30, %v823_v31 }
 0x114   :  { %v827_v34 = vadd.f32 %v826_v32, %v825_v33 }
 0x116   :  { %828 = vadd.xlane.f32.xlu1 %v827_v34 }
 0x14a   :  { %v413_v35 = vpop.f32.mrb[0].mxu1 }
 0x14b   :  { %v626_v36 = vpop.f32.mrb[0].mxu0  ;;  %v415_v38 = vpop.f32.mrb[1].mxu1 }
 0x14c   :  { %v627_v37 = vadd.f32 %v626_v36, %v413_v35  ;;  %v628_v39 = vpop.f32.mrb[1].mxu0  ;;  %v417_v41 = vpop.f32.mrb[2].mxu1  ;;  %v683_v35 = vld [vmem:[#allocation9 + $0x10] sm:$0xff] }
 0x14d   :  { %v629_v40 = vadd.f32 %v628_v39, %v415_v38  ;;  %v630_v42 = vpop.f32.mrb[2].mxu0  ;;  %v419_v45 = vpop.f32.mrb[3].mxu1  ;;  %v684_v38 = vld [vmem:[#allocation9 + $0x18] sm:$0xff] }
 0x14e   :  { %v645_v43 = vmul.f32 %v627_v37, %v627_v37  ;;  %v631_v44 = vadd.f32 %v630_v42, %v417_v41  ;;  %v632_v46 = vpop.f32.mrb[3].mxu0 }
 0x14f   :  { %v649_v47 = vmul.f32 %v629_v40, %v629_v40  ;;  %v633_v48 = vadd.f32 %v632_v46, %v419_v45 }
 0x150   :  { %v646_v49 = vmul.f32 %v631_v44, %v631_v44 }
 0x151   :  { %v653_v50 = vadd.f32 %v649_v47, %v645_v43  ;;  %v650_v51 = vmul.f32 %v633_v48, %v633_v48 }
 0x152   :  { %v423_v54 = vpop.f32.mrb[4].mxu1 }
 0x153   :  { %v657_v52 = vadd.f32 1e-09, %v653_v50  ;;  %v654_v53 = vadd.f32 %v650_v51, %v646_v49  ;;  %v636_v55 = vpop.f32.mrb[4].mxu0  ;;  %v425_v57 = vpop.f32.mrb[5].mxu1 }
 0x154   :  { %v637_v56 = vadd.f32 %v636_v55, %v423_v54  ;;  %v638_v58 = vpop.f32.mrb[5].mxu0  ;;  %v427_v61 = vpop.f32.mrb[6].mxu1 }
 0x155   :  { %1070 = vlog2.f32 %v657_v52  ;;  %v658_v59 = vadd.f32 1e-09, %v654_v53  ;;  %v639_v60 = vadd.f32 %v638_v58, %v425_v57  ;;  %v640_v62 = vpop.f32.mrb[6].mxu0  ;;  %v429_v1 = vpop.f32.mrb[7].mxu1 }
 0x156   :  { %v647_v63 = vmul.f32 %v637_v56, %v637_v56  ;;  %v641_v0 = vadd.f32 %v640_v62, %v427_v61  ;;  %v642_v2 = vpop.f32.mrb[7].mxu0 }
 0x157   :  { %1072 = vlog2.f32 %v658_v59  ;;  %v651_v3 = vmul.f32 %v639_v60, %v639_v60  ;;  %v643_v4 = vadd.f32 %v642_v2, %v429_v1 }
 0x158   :  { %v648_v5 = vmul.f32 %v641_v0, %v641_v0 }
 0x159   :  { %v655_v6 = vadd.f32 %v651_v3, %v647_v63  ;;  %v652_v7 = vmul.f32 %v643_v4, %v643_v4 }
 0x15b   :  { %v659_v8 = vadd.f32 1e-09, %v655_v6  ;;  %v656_v9 = vadd.f32 %v652_v7, %v648_v5 }
 0x15d   :  { %1074 = vlog2.f32 %v659_v8  ;;  %v660_v10 = vadd.f32 1e-09, %v656_v9 }
 0x15f   :  { %v1071_v11 = vpop.eup %1070  ;;  %1076 = vlog2.f32 %v660_v10 }
 0x160   :  { %v662_v12 = vmul.f32 0.6931472, %v1071_v11 }
 0x161   :  { %v1073_v13 = vpop.eup %1072 }
 0x162   :  { %v669_v14 = vmul.f32 0.15, %v662_v12  ;;  %v664_v15 = vmul.f32 0.6931472, %v1073_v13 }
 0x164   :  { %v673_v16 = vmul.f32 1.442695, %v669_v14  ;;  %v670_v17 = vmul.f32 0.15, %v664_v15 }
 0x166   :  { %1078 = vpow2.f32 %v673_v16  ;;  %v675_v18 = vmul.f32 1.442695, %v670_v17 }
 0x167   :  { %v1075_v19 = vpop.eup %1074 }
 0x168   :  { %1080 = vpow2.f32 %v675_v18  ;;  %v666_v20 = vmul.f32 0.6931472, %v1075_v19 }
 0x169   :  { %v1077_v21 = vpop.eup %1076 }
 0x16a   :  { %v671_v22 = vmul.f32 0.15, %v666_v20  ;;  %v668_v23 = vmul.f32 0.6931472, %v1077_v21 }
 0x16c   :  { %v677_v24 = vmul.f32 1.442695, %v671_v22  ;;  %v672_v25 = vmul.f32 0.15, %v668_v23 }
 0x16e   :  { %1082 = vpow2.f32 %v677_v24  ;;  %v679_v26 = vmul.f32 1.442695, %v672_v25 }
 0x170   :  { %v1079_v28 = vpop.eup %1078  ;;  %1084 = vpow2.f32 %v679_v26 }
 0x171   :  { %v685_v30 = vsub.f32 %v1079_v28, %v681_v27 }
 0x172   :  { %v1081_v31 = vpop.eup %1080 }
 0x173   :  { %v686_v32 = vsub.f32 %v1081_v31, %v682_v29  ;;  %v693_v33 = vmul.f32 %v685_v30, %v685_v30 }
 0x175   :  { %v694_v34 = vmul.f32 %v686_v32, %v686_v32 }
 0x177   :  { %v805_v36 = vadd.f32 %v694_v34, %v693_v33 }
 0x178   :  { %v1083_v37 = vpop.eup %1082 }
 0x179   :  { %v687_v39 = vsub.f32 %v1083_v37, %v683_v35 }
 0x17a   :  { %v1085_v40 = vpop.eup %1084 }
 0x17b   :  { %v688_v41 = vsub.f32 %v1085_v40, %v684_v38  ;;  %v695_v42 = vmul.f32 %v687_v39, %v687_v39 }
 0x17d   :  { %v696_v43 = vmul.f32 %v688_v41, %v688_v41  ;;  %v806_v44 = vadd.f32 %v805_v36, %v695_v42 }
 0x17f   :  { %v807_v45 = vadd.f32 %v806_v44, %v696_v43 }
 0x181   :  { %808 = vadd.xlane.f32.xlu0 %v807_v45 }
 0x1a3   :  { %v829_v46 = vpop.xlane.xlu1 %828 }
 0x1a4   :  { %v830_v47 = vrot.slane %v829_v46, 4 }
 0x1a6   :  { %v831_v48 = vadd.f32 %v830_v47, %v829_v46 }
 0x1a8   :  { %v832_v49 = vrot.slane %v831_v48, 2 }
 0x1aa   :  { %v833_v53 = vadd.f32 %v832_v49, %v831_v48 }
 0x1ac   :  { %v834_v56 = vrot.slane %v833_v53, 1 }
 0x1ae   :  { %v835_v59 = vadd.f32 %v834_v56, %v833_v53 }
 0x20e   :  { %v809_v50 = vpop.xlane.xlu0 %808 }
 0x20f   :  { %v810_v51 = vrot.slane %v809_v50, 4 }
 0x211   :  { %v811_v52 = vadd.f32 %v810_v51, %v809_v50 }
 0x213   :  { %v812_v54 = vrot.slane %v811_v52, 2 }
 0x215   :  { %v813_v55 = vadd.f32 %v812_v54, %v811_v52 }
 0x217   :  { %v814_v57 = vrot.slane %v813_v55, 1 }
 0x219   :  { %v815_v58 = vadd.f32 %v814_v57, %v813_v55 }
 0x21b   :  { %943 = vpush %v815_v58 }
 0x21c   :  { %945 = vpush %v835_v59 }
 0x24c   :  { %s944_s5 = spop %943 }
 0x24d   :  { %s946_s23 = spop %945 }
 0x24e   :  { %s837_s25 = sadd.f32 %s946_s23, %s944_s5 }
 0x250   :  { %839 = sst [smem:[#allocation10]] %s837_s25 }
 0x251   :  { %1161 = shalt.err (!%p1158_p12)
}
 0x252   :  { %s1174_s1 = smov [#allocation10]  }
 0x253   :  { %847 = dma.smem_to_hbm %s1174_s1, 16, %s1343_s6, [#allocation6]  }
 0x254   :  { %1166 = dma.done.wait [#allocation6], 16  }
 0x255   :  { %1167 = vsyncadd [#allocation6], 4294967280 }
 0x256   :  { %851 = sfence }
 0x257   :  { %852 = vsyncpa [#allocation5], 1 }
 0x258   :  { %853 = vsyncpa [#allocation8], 1 }
 0x259   :  { %854 = vsyncpa [#allocation6], 1 }

</bundles_post_ra>
